<compile_context>
chip_gen: v5e
topology: v5e:2x2
jax: 0.10.0
libtpu: 0.0.40
codegen_flags: <defaults>
</compile_context>

<pallas_src>
import math

import jax
import jax.numpy as jnp
import numpy as np
from jax.experimental import pallas as pl
from jax.experimental.pallas import tpu as pltpu


def eafnn_kernel(inp_ref, x_ref, c_ref, nb_ref, w_ref, san_ref, wu_ref):
    """One lane-tile of the EAFNN forward pass.

    inp_ref : (F, T)      VMEM  -- input, features x data-tile (data on lanes)
    x_ref   : (X, T)      VMEM  -- consequent input, same layout
    c_ref   : (F, L, 1)   VMEM  -- Gaussian centers, per-feature rule columns
    nb_ref  : (F, L, 1)   VMEM  -- precomputed -1/(2*b^2), same layout
    w_ref   : (X*Y, L, 1) VMEM  -- consequent weights, per-(k,y) rule columns
    san_ref : (L, T)      VMEM out -- normalized firing strengths (disanceng)
    wu_ref  : (Y, T)      VMEM out -- defuzzified output (diwuceng)
    """
    F, T = inp_ref.shape
    L = san_ref.shape[0]
    X = x_ref.shape[0]
    Y = wu_ref.shape[0]

    inp = inp_ref[...]   # (F, T)
    xv = x_ref[...]      # (X, T)

    # Layers 1+2 fused: accumulate the exponent over features, one exp per rule,
    # all as dense (L, T) tiles (rules packed on the sublane axis).
    expo = None
    for i in range(F):
        row = jnp.broadcast_to(inp[i:i + 1, :], (L, T))      # data row i across rules
        cc = jnp.broadcast_to(c_ref[i], (L, T))              # (L,1) -> (L,T) centers
        nb = jnp.broadcast_to(nb_ref[i], (L, T))             # (L,1) -> (L,T) -1/(2 b^2)
        d = row - cc
        term = d * d * nb
        expo = term if expo is None else expo + term
    dier = jnp.exp(expo) + 0.001                             # (L, T), single exp call

    # Layer 3: normalize over rules (sublane reduce + EUP reciprocal).
    s = jnp.sum(dier, axis=0, keepdims=True)                 # (1, T)
    san = dier * pl.reciprocal(s, approx=False)              # (L, T)
    san_ref[...] = san

    # Layers 4+5: disi[j, y, :] = sum_k w[j, k, y] * x[k, :];
    #             wu[y, :] = sum_j san[j, :] * disi[j, y, :].
    for y in range(Y):
        disi_y = None
        for k in range(X):
            wcol = jnp.broadcast_to(w_ref[k * Y + y], (L, T))   # (L,1) -> (L,T)
            xrow = jnp.broadcast_to(xv[k:k + 1, :], (L, T))     # (1,T) -> (L,T)
            term = wcol * xrow
            disi_y = term if disi_y is None else disi_y + term
        wu_ref[y:y + 1, :] = jnp.sum(san * disi_y, axis=0, keepdims=True)


def eafnn_forward(inp, x, c, b, w, tile_n=1024):
    """inp: (N, F), x: (N, X), c/b: (F, L), w: (L, X, Y)  ->  (san (L, N), wu (Y, N))."""
    N, F = inp.shape
    X = x.shape[1]
    L = c.shape[1]
    Y = w.shape[2]

    # Lane tile: multiple of 128, capped at the (128-rounded) data length.
    np128 = ((N + 127) // 128) * 128
    tile_n = max(128, min(((tile_n + 127) // 128) * 128, np128))
    Np = ((N + tile_n - 1) // tile_n) * tile_n
    grid = (Np // tile_n,)

    inp_T = jnp.pad(inp.astype(jnp.float32).T, ((0, 0), (0, Np - N)))   # (F, Np)
    x_T = jnp.pad(x.astype(jnp.float32).T, ((0, 0), (0, Np - N)))       # (X, Np)

    c3 = c.astype(jnp.float32).reshape(F, L, 1)                          # centers
    nb3 = (-1.0 / (2.0 * jnp.square(b.astype(jnp.float32)))).reshape(F, L, 1)
    w3 = jnp.transpose(w.astype(jnp.float32), (1, 2, 0)).reshape(X * Y, L, 1)

    san_p, wu_p = pl.pallas_call(
        eafnn_kernel,
        grid=grid,
        in_specs=[
            pl.BlockSpec((F, tile_n), lambda i: (0, i)),       # inp_T tile
            pl.BlockSpec((X, tile_n), lambda i: (0, i)),       # x_T tile
            pl.BlockSpec((F, L, 1), lambda i: (0, 0, 0)),      # centers (resident)
            pl.BlockSpec((F, L, 1), lambda i: (0, 0, 0)),      # -1/(2 b^2) (resident)
            pl.BlockSpec((X * Y, L, 1), lambda i: (0, 0, 0)),  # weights (resident)
        ],
        out_specs=(
            pl.BlockSpec((L, tile_n), lambda i: (0, i)),
            pl.BlockSpec((Y, tile_n), lambda i: (0, i)),
        ),
        out_shape=(
            jax.ShapeDtypeStruct((L, Np), jnp.float32),
            jax.ShapeDtypeStruct((Y, Np), jnp.float32),
        ),
        compiler_params=pltpu.CompilerParams(
            dimension_semantics=("parallel",),
        ),
    )(inp_T, x_T, c3, nb3, w3)

    return san_p[:, :N], wu_p[:, :N]


def eafnn_reference(inp, x, c, b, w):
    """Pure-JAX reference mirroring the PyTorch forward."""
    inpT = inp.astype(jnp.float32).T          # (F, N)
    xT = x.astype(jnp.float32).T              # (X, N)
    diyi = jnp.exp(-(inpT[:, None, :] - c[:, :, None]) ** 2
                   / (2.0 * b[:, :, None] ** 2))          # (F, L, N)
    dier = jnp.prod(diyi, axis=0) + 0.001                 # (L, N)
    san = dier / jnp.sum(dier, axis=0, keepdims=True)     # (L, N)
    disi = jnp.einsum('lxy,xn->lyn', w, xT)               # (L, Y, N)
    wu = jnp.einsum('ln,lyn->yn', san, disi)              # (Y, N)
    return san, wu


if __name__ == "__main__":
    # Shapes consistent with the module defaults:
    # ruler_num L=5, input_num F=2, x_num X=1, y_num Y=1.
    F, L, X, Y = 2, 5, 1, 1

    key = jax.random.PRNGKey(0)
    k1, k2, k3, k4, k5 = jax.random.split(key, 5)

    # Deterministic xavier-uniform-like init (shapes from __init__).
    bc = math.sqrt(6.0 / (F + L))
    c = jax.random.uniform(k3, (F, L), jnp.float32, minval=-bc, maxval=bc)
    # Widths kept away from zero (xavier can produce ~0 widths -> degenerate Gaussians).
    b = jax.random.uniform(k4, (F, L), jnp.float32, minval=0.5, maxval=1.5)
    bw = math.sqrt(6.0 / (X + Y))
    w = jax.random.uniform(k5, (L, X, Y), jnp.float32, minval=-bw, maxval=bw)

    # Case 1: tiny batch (single tile).
    N = 8
    inp = jax.random.normal(k1, (N, F), dtype=jnp.float32)
    x = jax.random.normal(k2, (N, X), dtype=jnp.float32)
    san, wu = eafnn_forward(inp, x, c, b, w)
    jax.block_until_ready((san, wu))
    san_ref, wu_ref = eafnn_reference(inp, x, c, b, w)
    np.testing.assert_allclose(np.asarray(san), np.asarray(san_ref), rtol=1e-4, atol=1e-4)
    np.testing.assert_allclose(np.asarray(wu), np.asarray(wu_ref), rtol=1e-4, atol=1e-4)
    assert san.shape == (L, N) and wu.shape == (Y, N)

    # Case 2: larger ragged batch exercising the multi-tile grid path.
    N2 = 300
    inp2 = jax.random.normal(k1, (N2, F), dtype=jnp.float32)
    x2 = jax.random.normal(k2, (N2, X), dtype=jnp.float32)
    san2, wu2 = eafnn_forward(inp2, x2, c, b, w, tile_n=128)
    jax.block_until_ready((san2, wu2))
    san2_ref, wu2_ref = eafnn_reference(inp2, x2, c, b, w)
    np.testing.assert_allclose(np.asarray(san2), np.asarray(san2_ref), rtol=1e-4, atol=1e-4)
    np.testing.assert_allclose(np.asarray(wu2), np.asarray(wu2_ref), rtol=1e-4, atol=1e-4)

    print("KERNEL_OK")
</pallas_src>

<mosaic_0001>
module attributes {stable_mosaic.version = 11 : i64} {
  func.func @eafnn_kernel(%arg0: i32, %arg1: memref<2x128xf32, #tpu.memory_space<vmem>>, %arg2: memref<1x128xf32, #tpu.memory_space<vmem>>, %arg3: memref<2x5x1xf32, #tpu.memory_space<vmem>>, %arg4: memref<2x5x1xf32, #tpu.memory_space<vmem>>, %arg5: memref<1x5x1xf32, #tpu.memory_space<vmem>>, %arg6: memref<5x128xf32, #tpu.memory_space<vmem>>, %arg7: memref<1x128xf32, #tpu.memory_space<vmem>>) attributes {dimension_semantics = [#tpu.dimension_semantics<parallel>], iteration_bounds = array<i64: 1>, scalar_prefetch = 0 : i64, scratch_operands = 0 : i64, tpu.core_type = #tpu.core_type<tc>, window_params = [{transform_indices = @transform_0, window_bounds = array<i64: 2, 128>}, {transform_indices = @transform_1, window_bounds = array<i64: 1, 128>}, {pipeline_mode = #tpu.pipeline_mode<synchronous>, transform_indices = @transform_2, window_bounds = array<i64: 2, 5, 1>}, {pipeline_mode = #tpu.pipeline_mode<synchronous>, transform_indices = @transform_3, window_bounds = array<i64: 2, 5, 1>}, {pipeline_mode = #tpu.pipeline_mode<synchronous>, transform_indices = @transform_4, window_bounds = array<i64: 1, 5, 1>}, {transform_indices = @transform_5, window_bounds = array<i64: 5, 128>}, {transform_indices = @transform_6, window_bounds = array<i64: 1, 128>}]} {
    %c0 = arith.constant 0 : index
    %c0_0 = arith.constant 0 : index
    %0 = vector.load %arg1[%c0, %c0_0] : memref<2x128xf32, #tpu.memory_space<vmem>>, vector<2x128xf32>
    %c0_1 = arith.constant 0 : index
    %c0_2 = arith.constant 0 : index
    %1 = vector.load %arg2[%c0_1, %c0_2] : memref<1x128xf32, #tpu.memory_space<vmem>>, vector<1x128xf32>
    %2 = vector.extract_strided_slice %0 {offsets = [0, 0], sizes = [1, 128], strides = [1, 1]} : vector<2x128xf32> to vector<1x128xf32>
    %3 = vector.shape_cast %2 : vector<1x128xf32> to vector<1x128xf32>
    %4 = vector.broadcast %3 : vector<1x128xf32> to vector<5x128xf32>
    %c0_3 = arith.constant 0 : index
    %c0_4 = arith.constant 0 : index
    %c0_5 = arith.constant 0 : index
    %5 = vector.load %arg3[%c0_3, %c0_4, %c0_5] : memref<2x5x1xf32, #tpu.memory_space<vmem>>, vector<1x5x1xf32>
    %6 = vector.shape_cast %5 : vector<1x5x1xf32> to vector<5x1xf32>
    %7 = vector.shape_cast %6 : vector<5x1xf32> to vector<5x1xf32>
    %8 = vector.broadcast %7 : vector<5x1xf32> to vector<5x128xf32>
    %c0_6 = arith.constant 0 : index
    %c0_7 = arith.constant 0 : index
    %c0_8 = arith.constant 0 : index
    %9 = vector.load %arg4[%c0_6, %c0_7, %c0_8] : memref<2x5x1xf32, #tpu.memory_space<vmem>>, vector<1x5x1xf32>
    %10 = vector.shape_cast %9 : vector<1x5x1xf32> to vector<5x1xf32>
    %11 = vector.shape_cast %10 : vector<5x1xf32> to vector<5x1xf32>
    %12 = vector.broadcast %11 : vector<5x1xf32> to vector<5x128xf32>
    %13 = arith.subf %4, %8 : vector<5x128xf32>
    %14 = arith.mulf %13, %13 : vector<5x128xf32>
    %15 = arith.mulf %14, %12 : vector<5x128xf32>
    %16 = vector.extract_strided_slice %0 {offsets = [1, 0], sizes = [1, 128], strides = [1, 1]} : vector<2x128xf32> to vector<1x128xf32>
    %17 = vector.shape_cast %16 : vector<1x128xf32> to vector<1x128xf32>
    %18 = vector.broadcast %17 : vector<1x128xf32> to vector<5x128xf32>
    %c1 = arith.constant 1 : index
    %c0_9 = arith.constant 0 : index
    %c0_10 = arith.constant 0 : index
    %19 = vector.load %arg3[%c1, %c0_9, %c0_10] : memref<2x5x1xf32, #tpu.memory_space<vmem>>, vector<1x5x1xf32>
    %20 = vector.shape_cast %19 : vector<1x5x1xf32> to vector<5x1xf32>
    %21 = vector.shape_cast %20 : vector<5x1xf32> to vector<5x1xf32>
    %22 = vector.broadcast %21 : vector<5x1xf32> to vector<5x128xf32>
    %c1_11 = arith.constant 1 : index
    %c0_12 = arith.constant 0 : index
    %c0_13 = arith.constant 0 : index
    %23 = vector.load %arg4[%c1_11, %c0_12, %c0_13] : memref<2x5x1xf32, #tpu.memory_space<vmem>>, vector<1x5x1xf32>
    %24 = vector.shape_cast %23 : vector<1x5x1xf32> to vector<5x1xf32>
    %25 = vector.shape_cast %24 : vector<5x1xf32> to vector<5x1xf32>
    %26 = vector.broadcast %25 : vector<5x1xf32> to vector<5x128xf32>
    %27 = arith.subf %18, %22 : vector<5x128xf32>
    %28 = arith.mulf %27, %27 : vector<5x128xf32>
    %29 = arith.mulf %28, %26 : vector<5x128xf32>
    %30 = arith.addf %15, %29 : vector<5x128xf32>
    %31 = math.exp %30 : vector<5x128xf32>
    %cst = arith.constant 1.000000e-03 : f32
    %32 = vector.broadcast %cst : f32 to vector<5x128xf32>
    %33 = arith.addf %31, %32 : vector<5x128xf32>
    %cst_14 = arith.constant dense<0.000000e+00> : vector<128xf32>
    %34 = vector.multi_reduction <add>, %33, %cst_14 [0] : vector<5x128xf32> to vector<128xf32>
    %35 = vector.shape_cast %34 : vector<128xf32> to vector<1x128xf32>
    %36 = tpu.reciprocal %35 : vector<1x128xf32> -> vector<1x128xf32>
    %37 = vector.broadcast %36 : vector<1x128xf32> to vector<5x128xf32>
    %38 = arith.mulf %33, %37 : vector<5x128xf32>
    %c0_15 = arith.constant 0 : index
    %c0_16 = arith.constant 0 : index
    %39 = vector.load %arg6[%c0_15, %c0_16] : memref<5x128xf32, #tpu.memory_space<vmem>>, vector<5x128xf32>
    tpu.vector_store %arg6[%c0_15, %c0_16], %38 {strides = array<i32>} : memref<5x128xf32, #tpu.memory_space<vmem>>, vector<5x128xf32>,
    %c0_17 = arith.constant 0 : index
    %c0_18 = arith.constant 0 : index
    %c0_19 = arith.constant 0 : index
    %40 = vector.load %arg5[%c0_17, %c0_18, %c0_19] : memref<1x5x1xf32, #tpu.memory_space<vmem>>, vector<1x5x1xf32>
    %41 = vector.shape_cast %40 : vector<1x5x1xf32> to vector<5x1xf32>
    %42 = vector.shape_cast %41 : vector<5x1xf32> to vector<5x1xf32>
    %43 = vector.broadcast %42 : vector<5x1xf32> to vector<5x128xf32>
    %44 = vector.shape_cast %1 : vector<1x128xf32> to vector<1x128xf32>
    %45 = vector.broadcast %44 : vector<1x128xf32> to vector<5x128xf32>
    %46 = arith.mulf %43, %45 : vector<5x128xf32>
    %47 = arith.mulf %38, %46 : vector<5x128xf32>
    %cst_20 = arith.constant dense<0.000000e+00> : vector<128xf32>
    %48 = vector.multi_reduction <add>, %47, %cst_20 [0] : vector<5x128xf32> to vector<128xf32>
    %49 = vector.shape_cast %48 : vector<128xf32> to vector<1x128xf32>
    %c0_21 = arith.constant 0 : index
    %c0_22 = arith.constant 0 : index
    %50 = vector.load %arg7[%c0_21, %c0_22] : memref<1x128xf32, #tpu.memory_space<vmem>>, vector<1x128xf32>
    tpu.vector_store %arg7[%c0_21, %c0_22], %49 {strides = array<i32>} : memref<1x128xf32, #tpu.memory_space<vmem>>, vector<1x128xf32>,
    return
  }
  func.func @transform_0(%arg0: i32) -> (i32, i32) {
    %c0_i32 = arith.constant 0 : i32
    %c0_i32_0 = arith.constant 0 : i32
    return %c0_i32, %arg0 : i32, i32
  }
  func.func @transform_1(%arg0: i32) -> (i32, i32) {
    %c0_i32 = arith.constant 0 : i32
    %c0_i32_0 = arith.constant 0 : i32
    return %c0_i32, %arg0 : i32, i32
  }
  func.func @transform_2(%arg0: i32) -> (i32, i32, i32) {
    %c0_i32 = arith.constant 0 : i32
    %c0_i32_0 = arith.constant 0 : i32
    %c0_i32_1 = arith.constant 0 : i32
    %c0_i32_2 = arith.constant 0 : i32
    return %c0_i32, %c0_i32_0, %c0_i32_1 : i32, i32, i32
  }
  func.func @transform_3(%arg0: i32) -> (i32, i32, i32) {
    %c0_i32 = arith.constant 0 : i32
    %c0_i32_0 = arith.constant 0 : i32
    %c0_i32_1 = arith.constant 0 : i32
    %c0_i32_2 = arith.constant 0 : i32
    return %c0_i32, %c0_i32_0, %c0_i32_1 : i32, i32, i32
  }
  func.func @transform_4(%arg0: i32) -> (i32, i32, i32) {
    %c0_i32 = arith.constant 0 : i32
    %c0_i32_0 = arith.constant 0 : i32
    %c0_i32_1 = arith.constant 0 : i32
    %c0_i32_2 = arith.constant 0 : i32
    return %c0_i32, %c0_i32_0, %c0_i32_1 : i32, i32, i32
  }
  func.func @transform_5(%arg0: i32) -> (i32, i32) {
    %c0_i32 = arith.constant 0 : i32
    %c0_i32_0 = arith.constant 0 : i32
    return %c0_i32, %arg0 : i32, i32
  }
  func.func @transform_6(%arg0: i32) -> (i32, i32) {
    %c0_i32 = arith.constant 0 : i32
    %c0_i32_0 = arith.constant 0 : i32
    return %c0_i32, %arg0 : i32, i32
  }
}

</mosaic_0001>

<bundles_post_ra>
// kernel: tpu_custom_call.1
= control target key start
LH: loop header
LB: loop body
LE: loop exit
PB: predicated region body
PF: predicated region fallthrough
CT: control target
= control target key end

     0   :  { %12 = vsyncpa [#allocation3], 0  ;;  %v204_v2 = vmov 0   ;;  %s271_s0 = inlined_call_operand.vmem [shape: f32[2,128], index: 0, kind: input, shape index: {}]   ;;  %s272_s1 = inlined_call_operand.vmem [shape: f32[1,128], index: 1, kind: input, shape index: {}]   ;;  %s273_s2 = inlined_call_operand.vmem [shape: f32[2,5,1], index: 2, kind: input, shape index: {}]   ;;  %s274_s3 = inlined_call_operand.vmem [shape: f32[2,5,1], index: 3, kind: input, shape index: {}]   ;;  %s275_s4 = inlined_call_operand.vmem [shape: f32[1,5,1], index: 4, kind: input, shape index: {}]   ;;  %s276_s5 = inlined_call_operand.hbm [shape: f32[5,128], index: 5, kind: output, shape index: {0}]   ;;  %s277_s6 = inlined_call_operand.hbm [shape: f32[1,128], index: 6, kind: output, shape index: {1}]  }
   0x1   :  { %v33_v0 = vld [vmem:[%s274_s3] sm:$0x1f]  ;;  %145 = vset.pattern.permute.xlu1 %v204_v2  ;;  %144 = vset.pattern.permute.xlu0 %v204_v2 }
   0x2   :  { %v27_v1 = vld [vmem:[%s273_s2] sm:$0x1f]  ;;  %36 = vperm.xlu1 %145, %v33_v0  }
   0x3   :  { %v88_v3 = vld [vmem:[%s275_s4] sm:$0x1f]  ;;  %30 = vperm.xlu0 %144, %v27_v1  }
   0x4   :  { %13 = vsyncpa [#allocation5], 0  ;;  %146 = vset.pattern.permute.xlu2 %v204_v2  ;;  %v140_v4 = vld [vmem:[%s274_s3 + $0x8] sm:$0x1f]  ;;  %v24_v6 = vld [vmem:[%s271_s0] sm:$0x3] }
   0x5   :  { %91 = vperm.xlu2 %146, %v88_v3   ;;  %v139_v5 = vld [vmem:[%s273_s2 + $0x8] sm:$0x1f]  ;;  %v26_v8 = vperm.slane %v24_v6, 0  ;;  %v42_v11 = vperm.slane %v24_v6, 1  ;;  %vm64_vm0 = vcmask 1044480   ;;  %s205_s3 = smov [#allocation2]  }
   0x6   :  { %v147_v36 = vld [vmem:[%s272_s1] ss:$0 sm:$0xff]  ;;  %s112_s4 = sshll.u32 %s205_s3, 4  ;;  %s114_s11 = sshll.u32 %s276_s5, 4  ;;  %s113_s4 = int_to_ptr.vmem [resolvable:$true] %s112_s4  ;;  %s115_s11 = int_to_ptr.hbm [resolvable:$true] %s114_s11 }
   0x7   :  { %s206_s1 = smov [#allocation4]   ;;  %s125_s14 = sshll.u32 %s277_s6, 4  ;;  %s126_s14 = int_to_ptr.hbm [resolvable:$true] %s125_s14 }
   0x8   :  { %s123_s12 = sshll.u32 %s206_s1, 4  ;;  %s124_s12 = int_to_ptr.vmem [resolvable:$true] %s123_s12 }
   0xa   :  { %54 = vperm.xlu1 %145, %v140_v4  }
   0xb   :  { %47 = vperm.xlu0 %144, %v139_v5  }
  0x5f   :  { %v92_v37 = vpop.permute.xlu2 %91 }
  0x60   :  { %v97_v41 = vmul.f32 %v147_v36, %v92_v37 }
  0x74   :  { %v37_v9 = vpop.permute.xlu1 %36 }
  0x75   :  { %v31_v7 = vpop.permute.xlu0 %30 }
  0x76   :  { %v39_v10 = vsub.f32 %v26_v8, %v31_v7 }
  0x78   :  { %v40_v13 = vmul.f32 %v39_v10, %v39_v10 }
  0x7a   :  { %v41_v17 = vmul.f32 %v40_v13, %v37_v9 }
  0x7c   :  { %v55_v16 = vpop.permute.xlu1 %54 }
  0x7d   :  { %v48_v12 = vpop.permute.xlu0 %47 }
  0x7e   :  { %v57_v14 = vsub.f32 %v42_v11, %v48_v12 }
  0x80   :  { %v58_v15 = vmul.f32 %v57_v14, %v57_v14 }
  0x82   :  { %v59_v18 = vmul.f32 %v58_v15, %v55_v16 }
  0x84   :  { %v60_v19 = vadd.f32 %v59_v18, %v41_v17 }
  0x86   :  { %v61_v20 = vmul.f32 1.442695, %v60_v19 }
  0x88   :  { %148 = vpow2.f32 %v61_v20 }
  0x8e   :  { %v149_v21 = vpop.eup %148 }
  0x8f   :  { %v63_v22 = vadd.f32 0.001, %v149_v21 }
  0x91   :  { %v65_v23 = vsel %vm64_vm0, %v63_v22, 0.0 }
  0x92   :  { %v66_v24 = vrot.slane %v65_v23, 4 }
  0x94   :  { %v67_v25 = vadd.f32 %v66_v24, %v65_v23 }
  0x96   :  { %v68_v26 = vrot.slane %v67_v25, 2 }
  0x98   :  { %v69_v27 = vadd.f32 %v68_v26, %v67_v25 }
  0x9a   :  { %v70_v28 = vrot.slane %v69_v27, 1 }
  0x9c   :  { %v71_v29 = vadd.f32 %v70_v28, %v69_v27 }
  0x9e   :  { %150 = vrcp.f32 %v71_v29  ;;  %v83_v33 = vand.u32 2147483648, %v71_v29  ;;  %v81_v35 = vand.u32 2147483647, %v71_v29  ;;  %vm77_vm2 = vweird.f32 %v71_v29 }
  0xa0   :  { %v84_v39 = vor.u32 1.1754944e-38, %v83_v33  ;;  %vm82_vm4 = vcmp.eq.f32.partialorder %v81_v35, 8.507059e+37 }
  0xa4   :  { %v151_v30 = vpop.eup %150 }
  0xa5   :  { %v73_v31 = vmul.f32 %v151_v30, %v71_v29  ;;  %vm78_vm1 = vweird.f32 %v151_v30 }
  0xa6   :  { %vm79_vm3 = vmor %vm77_vm2, %vm78_vm1 }
  0xa7   :  { %v74_v32 = vsub.f32 1.0, %v73_v31 }
  0xa9   :  { %v75_v34 = vmul.f32 %v151_v30, %v74_v32 }
  0xab   :  { %v76_v38 = vadd.f32 %v151_v30, %v75_v34 }
  0xad   :  { %v80_v40 = vsel %vm79_vm3, %v151_v30, %v76_v38 }
  0xae   :  { %v85_v42 = vsel %vm82_vm4, %v84_v39, %v80_v40 }
  0xaf   :  { %v86_v43 = vmul.f32 %v85_v42, %v63_v22 }
  0xb1   :  { %v98_v44 = vmul.f32 %v97_v41, %v86_v43  ;;  %87 = vst [vmem:[#allocation2] sm:$0x1f] %v86_v43 }
  0xb2   :  { %117 = dma.vmem_to_hbm [thread:$0]  %s113_s4, 128, %s115_s11, [#allocation3]  }
  0xb3   :  { %v99_v45 = vsel %vm64_vm0, %v98_v44, 0.0 }
  0xb4   :  { %v100_v46 = vrot.slane %v99_v45, 4 }
  0xb6   :  { %v101_v47 = vadd.f32 %v100_v46, %v99_v45 }
  0xb8   :  { %v102_v48 = vrot.slane %v101_v47, 2 }
  0xba   :  { %v103_v49 = vadd.f32 %v102_v48, %v101_v47 }
  0xbc   :  { %v104_v50 = vrot.slane %v103_v49, 1 }
  0xbe   :  { %v105_v51 = vadd.f32 %v104_v50, %v103_v49 }
  0xc0   :  { %106 = vst [vmem:[#allocation4] sm:$0x1] %v105_v51 }
  0xc1   :  { %128 = dma.vmem_to_hbm [thread:$0]  %s124_s12, 16, %s126_s14, [#allocation5]  }
  0xc2   :  { %200 = dma.done.wait [#allocation3], 128  }
  0xc3   :  { %201 = vsyncadd [#allocation3], 4294967168 }
  0xc4   :  { %202 = dma.done.wait [#allocation5], 16  }
  0xc5   :  { %203 = vsyncadd [#allocation5], 4294967280 }
  0xc6   :  { %137 = vsyncpa [#allocation3], 1 }
  0xc7   :  { %138 = vsyncpa [#allocation5], 1 }

</bundles_post_ra>
